<compile_context>
chip_gen: v7x
topology: tpu7x:2x2x1
jax: 0.10.0
libtpu: 0.0.40
codegen_flags: <defaults>
</compile_context>

<pallas_src>
import functools

import jax
import jax.numpy as jnp
from jax import lax
from jax.experimental import pallas as pl
from jax.experimental.pallas import tpu as pltpu


def _round_up(a, m):
    return (a + m - 1) // m * m


def _contrastive_kernel(xq_ref, xk_ref, gtq_ref, gtk_ref, out_ref,
                        num_acc, den_acc, *, inv_temp, n_valid, tile_k, mask_cols):
    k = pl.program_id(1)

    @pl.when(k == 0)
    def _init():
        num_acc[...] = jnp.zeros_like(num_acc)
        den_acc[...] = jnp.zeros_like(den_acc)

    # Fold 1/T into the query tile (O(TQ*D)) instead of dividing the [TQ,TK] sim matrix.
    xq = xq_ref[...]
    xq = xq * jnp.asarray(inv_temp, dtype=xq.dtype)

    # sim = (xq / T) @ xk.T  -> f32 accumulator; inputs stay in their native dtype (bf16 ok).
    sim = lax.dot_general(
        xq, xk_ref[...],
        dimension_numbers=(((1,), (1,)), ((), ())),
        preferred_element_type=jnp.float32,
    )

    # Unstabilized exp, identical semantics to the PyTorch reference.
    # (Caller should provide L2-normalized features or a suitable temperature; otherwise
    #  exp can overflow exactly as in torch.)
    e = jnp.exp(sim)

    if mask_cols:
        # Zero out padded key columns (only present when B was padded up to the tile).
        col = lax.broadcasted_iota(jnp.int32, e.shape, 1) + k * tile_k
        e = jnp.where(col < n_valid, e, 0.0)

    # pos_mask[r, c] = (gt_q[r] == gt_k[c]);  (TQ,1) vs (1,TK) broadcast.
    pos_mask = gtq_ref[...] == gtk_ref[...]

    num_acc[...] += jnp.sum(jnp.where(pos_mask, e, 0.0), axis=-1, keepdims=True)
    den_acc[...] += jnp.sum(e, axis=-1, keepdims=True)

    @pl.when(k == pl.num_programs(1) - 1)
    def _finalize():
        # loss_i = -log(num/den) == log(den) - log(num); avoids the divide, both logs
        # go to the EUP slot which has slack in the epilogue.
        out_ref[...] = jnp.log(den_acc[...]) - jnp.log(num_acc[...])


def contrastive_loss(instance_features, gt_ids, temperature=0.1):
    """instance_features: [B, 2C, 1, 1]; gt_ids: [B] int. Returns scalar f32 loss."""
    B = instance_features.shape[0]
    x = instance_features.reshape(B, -1)          # keep native dtype (no f32 up-cast)
    D = x.shape[1]
    gt = gt_ids.astype(jnp.int32)

    # Tile sizes: single tile for small B, 256-row/256-key streaming for large B.
    tile = _round_up(B, 8) if B <= 256 else 256
    b_pad = _round_up(B, tile)
    if b_pad != B:
        x = jnp.pad(x, ((0, b_pad - B), (0, 0)))
        gt = jnp.pad(gt, (0, b_pad - B), constant_values=-1)

    gt_col = gt.reshape(b_pad, 1)   # query-side ids (sublane-oriented)
    gt_row = gt.reshape(1, b_pad)   # key-side ids   (lane-oriented)

    nq = b_pad // tile
    nk = b_pad // tile

    kernel = functools.partial(
        _contrastive_kernel,
        inv_temp=1.0 / float(temperature),
        n_valid=B,
        tile_k=tile,
        mask_cols=(b_pad != B),
    )

    per_row = pl.pallas_call(
        kernel,
        out_shape=jax.ShapeDtypeStruct((b_pad, 1), jnp.float32),
        grid_spec=pltpu.PrefetchScalarGridSpec(
            num_scalar_prefetch=0,
            grid=(nq, nk),
            in_specs=[
                pl.BlockSpec((tile, D), lambda i, k: (i, 0)),   # query rows
                pl.BlockSpec((tile, D), lambda i, k: (k, 0)),   # streamed key rows
                pl.BlockSpec((tile, 1), lambda i, k: (i, 0)),   # gt ids (query side)
                pl.BlockSpec((1, tile), lambda i, k: (0, k)),   # gt ids (key side)
            ],
            out_specs=pl.BlockSpec((tile, 1), lambda i, k: (i, 0)),
            scratch_shapes=[
                pltpu.VMEM((tile, 1), jnp.float32),   # running numerator
                pltpu.VMEM((tile, 1), jnp.float32),   # running denominator
            ],
        ),
        compiler_params=pltpu.CompilerParams(
            dimension_semantics=("parallel", "arbitrary"),
            vmem_limit_bytes=32 * 1024 * 1024,
        ),
    )(x, x, gt_col, gt_row)

    # Tiny O(B) reduction in XLA; padded rows are sliced away.
    return jnp.sum(per_row[:B, 0]) / B


def _reference_loss(instance_features, gt_ids, temperature=0.1):
    # Pure-JAX reference mirroring the PyTorch loop semantics (unstabilized exp).
    B = instance_features.shape[0]
    x = instance_features.reshape(B, -1).astype(jnp.float32)
    sim = (x @ x.T) / temperature
    e = jnp.exp(sim)
    pos_mask = gt_ids[:, None] == gt_ids[None, :]
    num = jnp.sum(jnp.where(pos_mask, e, 0.0), axis=-1)
    den = jnp.sum(e, axis=-1)
    return jnp.sum(-jnp.log(num / den)) / B


if __name__ == "__main__":
    key = jax.random.PRNGKey(0)
    k_feat, k_ids = jax.random.split(key)

    B, C = 8, 16  # instance_features: [B, 2*C, 1, 1]
    feats = jax.random.normal(k_feat, (B, 2 * C, 1, 1), dtype=jnp.float32)
    # L2-normalize features (standard for contrastive learning).  Without this the
    # spec-faithful unstabilized exp(sim/0.1) overflows and both torch and this kernel
    # produce NaN — that was the cause of the previous failure.
    norms = jnp.sqrt(jnp.sum(feats.reshape(B, -1) ** 2, axis=1, keepdims=True))
    feats = feats / norms.reshape(B, 1, 1, 1)
    gt_ids = jax.random.randint(k_ids, (B,), 0, 4, dtype=jnp.int32)

    loss = contrastive_loss(feats, gt_ids, temperature=0.1)
    loss = jax.block_until_ready(loss)

    ref = _reference_loss(feats, gt_ids, temperature=0.1)
    assert bool(jnp.isfinite(loss)), loss
    assert jnp.allclose(loss, ref, rtol=1e-4, atol=1e-4), (loss, ref)

    print("KERNEL_OK")
</pallas_src>

<mosaic_0001>
module attributes {stable_mosaic.version = 11 : i64} {
  func.func @_contrastive_kernel(%arg0: i32, %arg1: i32, %arg2: memref<8x32xf32, #tpu.memory_space<vmem>>, %arg3: memref<8x32xf32, #tpu.memory_space<vmem>>, %arg4: memref<8x1xi32, #tpu.memory_space<vmem>>, %arg5: memref<1x8xi32, #tpu.memory_space<vmem>>, %arg6: memref<8x1xf32, #tpu.memory_space<vmem>>, %arg7: memref<8x1xf32, #tpu.memory_space<vmem>>, %arg8: memref<8x1xf32, #tpu.memory_space<vmem>>) attributes {dimension_semantics = [#tpu.dimension_semantics<parallel>, #tpu.dimension_semantics<arbitrary>], iteration_bounds = array<i64: 1, 1>, scalar_prefetch = 0 : i64, scratch_operands = 2 : i64, tpu.core_type = #tpu.core_type<tc>, window_params = [{transform_indices = @transform_0, window_bounds = array<i64: 8, 32>}, {transform_indices = @transform_1, window_bounds = array<i64: 8, 32>}, {transform_indices = @transform_2, window_bounds = array<i64: 8, 1>}, {transform_indices = @transform_3, window_bounds = array<i64: 1, 8>}, {transform_indices = @transform_4, window_bounds = array<i64: 8, 1>}]} {
    %c0_i32 = arith.constant 0 : i32
    %0 = arith.cmpi eq, %arg1, %c0_i32 : i32
    %1 = arith.extui %0 : i1 to i32
    %c0_i32_0 = arith.constant 0 : i32
    %2 = arith.cmpi ne, %1, %c0_i32_0 : i32
    scf.if %2 {
      %cst_22 = arith.constant 0.000000e+00 : f32
      %29 = vector.broadcast %cst_22 : f32 to vector<8x1xf32>
      %c0_23 = arith.constant 0 : index
      %c0_24 = arith.constant 0 : index
      %30 = vector.load %arg7[%c0_23, %c0_24] : memref<8x1xf32, #tpu.memory_space<vmem>>, vector<8x1xf32>
      tpu.vector_store %arg7[%c0_23, %c0_24], %29 {strides = array<i32>} : memref<8x1xf32, #tpu.memory_space<vmem>>, vector<8x1xf32>,
      %cst_25 = arith.constant 0.000000e+00 : f32
      %31 = vector.broadcast %cst_25 : f32 to vector<8x1xf32>
      %c0_26 = arith.constant 0 : index
      %c0_27 = arith.constant 0 : index
      %32 = vector.load %arg8[%c0_26, %c0_27] : memref<8x1xf32, #tpu.memory_space<vmem>>, vector<8x1xf32>
      tpu.vector_store %arg8[%c0_26, %c0_27], %31 {strides = array<i32>} : memref<8x1xf32, #tpu.memory_space<vmem>>, vector<8x1xf32>,
    } else {
    }
    %c0 = arith.constant 0 : index
    %c0_1 = arith.constant 0 : index
    %3 = vector.load %arg2[%c0, %c0_1] : memref<8x32xf32, #tpu.memory_space<vmem>>, vector<8x32xf32>
    %cst = arith.constant 1.000000e+01 : f32
    %4 = vector.broadcast %cst : f32 to vector<8x32xf32>
    %5 = arith.mulf %3, %4 : vector<8x32xf32>
    %c0_2 = arith.constant 0 : index
    %c0_3 = arith.constant 0 : index
    %6 = vector.load %arg3[%c0_2, %c0_3] : memref<8x32xf32, #tpu.memory_space<vmem>>, vector<8x32xf32>
    %cst_4 = arith.constant dense<0.000000e+00> : vector<8x8xf32>
    %7 = tpu.matmul %5, %6, %cst_4 {dimension_numbers = #tpu.dot_dimension_numbers<[1], [1], [0], [0], [0, 0, 1, 0], [], []>} : vector<8x32xf32>, vector<8x32xf32>, vector<8x8xf32> -> vector<8x8xf32>
    %8 = math.exp %7 : vector<8x8xf32>
    %c0_5 = arith.constant 0 : index
    %c0_6 = arith.constant 0 : index
    %9 = vector.load %arg4[%c0_5, %c0_6] : memref<8x1xi32, #tpu.memory_space<vmem>>, vector<8x1xi32>
    %c0_7 = arith.constant 0 : index
    %c0_8 = arith.constant 0 : index
    %10 = vector.load %arg5[%c0_7, %c0_8] : memref<1x8xi32, #tpu.memory_space<vmem>>, vector<1x8xi32>
    %11 = vector.broadcast %9 : vector<8x1xi32> to vector<8x8xi32>
    %12 = vector.broadcast %10 : vector<1x8xi32> to vector<8x8xi32>
    %13 = arith.cmpi eq, %11, %12 : vector<8x8xi32>
    %c0_9 = arith.constant 0 : index
    %c0_10 = arith.constant 0 : index
    %14 = vector.load %arg7[%c0_9, %c0_10] : memref<8x1xf32, #tpu.memory_space<vmem>>, vector<8x1xf32>
    %cst_11 = arith.constant 0.000000e+00 : f32
    %15 = vector.broadcast %cst_11 : f32 to vector<8x8xf32>
    %16 = arith.select %13, %8, %15 : vector<8x8xi1>, vector<8x8xf32>
    %cst_12 = arith.constant dense<0.000000e+00> : vector<8xf32>
    %17 = vector.multi_reduction <add>, %16, %cst_12 [1] : vector<8x8xf32> to vector<8xf32>
    %18 = vector.shape_cast %17 : vector<8xf32> to vector<8x1xf32>
    %19 = arith.addf %14, %18 : vector<8x1xf32>
    %c0_13 = arith.constant 0 : index
    %c0_14 = arith.constant 0 : index
    %20 = vector.load %arg7[%c0_13, %c0_14] : memref<8x1xf32, #tpu.memory_space<vmem>>, vector<8x1xf32>
    tpu.vector_store %arg7[%c0_13, %c0_14], %19 {strides = array<i32>} : memref<8x1xf32, #tpu.memory_space<vmem>>, vector<8x1xf32>,
    %c0_15 = arith.constant 0 : index
    %c0_16 = arith.constant 0 : index
    %21 = vector.load %arg8[%c0_15, %c0_16] : memref<8x1xf32, #tpu.memory_space<vmem>>, vector<8x1xf32>
    %cst_17 = arith.constant dense<0.000000e+00> : vector<8xf32>
    %22 = vector.multi_reduction <add>, %8, %cst_17 [1] : vector<8x8xf32> to vector<8xf32>
    %23 = vector.shape_cast %22 : vector<8xf32> to vector<8x1xf32>
    %24 = arith.addf %21, %23 : vector<8x1xf32>
    %c0_18 = arith.constant 0 : index
    %c0_19 = arith.constant 0 : index
    %25 = vector.load %arg8[%c0_18, %c0_19] : memref<8x1xf32, #tpu.memory_space<vmem>>, vector<8x1xf32>
    tpu.vector_store %arg8[%c0_18, %c0_19], %24 {strides = array<i32>} : memref<8x1xf32, #tpu.memory_space<vmem>>, vector<8x1xf32>,
    %c0_i32_20 = arith.constant 0 : i32
    %26 = arith.cmpi eq, %arg1, %c0_i32_20 : i32
    %27 = arith.extui %26 : i1 to i32
    %c0_i32_21 = arith.constant 0 : i32
    %28 = arith.cmpi ne, %27, %c0_i32_21 : i32
    scf.if %28 {
      %c0_22 = arith.constant 0 : index
      %c0_23 = arith.constant 0 : index
      %29 = vector.load %arg8[%c0_22, %c0_23] : memref<8x1xf32, #tpu.memory_space<vmem>>, vector<8x1xf32>
      %30 = math.log %29 : vector<8x1xf32>
      %c0_24 = arith.constant 0 : index
      %c0_25 = arith.constant 0 : index
      %31 = vector.load %arg7[%c0_24, %c0_25] : memref<8x1xf32, #tpu.memory_space<vmem>>, vector<8x1xf32>
      %32 = math.log %31 : vector<8x1xf32>
      %33 = arith.subf %30, %32 : vector<8x1xf32>
      %c0_26 = arith.constant 0 : index
      %c0_27 = arith.constant 0 : index
      %34 = vector.load %arg6[%c0_26, %c0_27] : memref<8x1xf32, #tpu.memory_space<vmem>>, vector<8x1xf32>
      tpu.vector_store %arg6[%c0_26, %c0_27], %33 {strides = array<i32>} : memref<8x1xf32, #tpu.memory_space<vmem>>, vector<8x1xf32>,
    } else {
    }
    return
  }
  func.func @transform_0(%arg0: i32, %arg1: i32) -> (i32, i32) {
    %c0_i32 = arith.constant 0 : i32
    %c0_i32_0 = arith.constant 0 : i32
    return %arg0, %c0_i32 : i32, i32
  }
  func.func @transform_1(%arg0: i32, %arg1: i32) -> (i32, i32) {
    %c0_i32 = arith.constant 0 : i32
    %c0_i32_0 = arith.constant 0 : i32
    return %arg1, %c0_i32 : i32, i32
  }
  func.func @transform_2(%arg0: i32, %arg1: i32) -> (i32, i32) {
    %c0_i32 = arith.constant 0 : i32
    %c0_i32_0 = arith.constant 0 : i32
    return %arg0, %c0_i32 : i32, i32
  }
  func.func @transform_3(%arg0: i32, %arg1: i32) -> (i32, i32) {
    %c0_i32 = arith.constant 0 : i32
    %c0_i32_0 = arith.constant 0 : i32
    return %c0_i32, %arg1 : i32, i32
  }
  func.func @transform_4(%arg0: i32, %arg1: i32) -> (i32, i32) {
    %c0_i32 = arith.constant 0 : i32
    %c0_i32_0 = arith.constant 0 : i32
    return %arg0, %c0_i32 : i32, i32
  }
}

</mosaic_0001>

<bundles_post_ra>
// kernel: tpu_custom_call.1
= control target key start
LH: loop header
LB: loop body
LE: loop exit
PB: predicated region body
PF: predicated region fallthrough
CT: control target
= control target key end

     0   :  { %9 = vsyncpa [#allocation5], 0  ;;  %s204_s15 = smov [#allocation4]   ;;  %s262_s0 = inlined_call_operand.vmem [shape: f32[8,32], index: 0, kind: input, shape index: {}]   ;;  %s263_s1 = inlined_call_operand.hbm [shape: f32[8,32], index: 1, kind: input, shape index: {}]   ;;  %s264_s2 = inlined_call_operand.vmem [shape: s32[8,1], index: 2, kind: input, shape index: {}]   ;;  %s265_s3 = inlined_call_operand.vmem [shape: s32[1,8], index: 3, kind: input, shape index: {}]   ;;  %s266_s4 = inlined_call_operand.vmem [shape: f32[8,1], index: 4, kind: output, shape index: {}]  }
   0x1   :  { %s18_s16 = sshll.u32 %s204_s15, 4  ;;  %s180_s19 = scalar_lea.hbm %s263_s1, 128  ;;  %s19_s16 = int_to_ptr.vmem [resolvable:$true] %s18_s16 }
   0x2   :  { %p181_p0 = scmp.ne.s32.totalorder %s263_s1, %s180_s19  ;;  %p184_p1 = scmp.lt.u32.totalorder %s180_s19, %s263_s1 }
   0x4   :  { %p186_p2 = pnand %p184_p1, %p181_p0 }
   0x6   :  { %189 = shalt.err (!%p186_p2)
}
   0x7   :  { %s190_s24 = scalar_lea.vmem %s19_s16, 128  ;;  %p195_p4 = scmp.lt.s32.totalorder %s19_s16, %s19_s16 }
   0x8   :  { %p191_p3 = scmp.ne.s32.totalorder %s19_s16, %s190_s24  ;;  %p196_p5 = scmp.lt.s32.totalorder %s190_s24, %s190_s24 }
   0xa   :  { %p197_p6 = por %p196_p5, %p195_p4 }
   0xc   :  { %p198_p7 = pnand %p197_p6, %p191_p3 }
   0xe   :  { %201 = shalt.err (!%p198_p7)
}
   0xf   :  { %21 = dma.hbm_to_vmem [thread:$0]  %s263_s1, 128, %s19_s16, [#allocation5]  }
  0x10   :  { %202 = dma.done.wait [#allocation5], 128  }
  0x11   :  { %203 = vsyncadd [#allocation5], 4294967168  ;;  %vm33_vm0 = vcmask 7168   ;;  %v205_v0 = vmov 0.0   ;;  %vm206_vm1 = vmmov 0   ;;  %v207_v1 = vmov 0  }
  0x12   :  { %34 = vst.msk [vmem:[#allocation2] sm:$0xff] %vm33_vm0, %v205_v0  ;;  %35 = vst.msk [vmem:[#allocation3] sm:$0xff] %vm33_vm0, %v205_v0  ;;  %164 = vmatprep.subr.mxu0 %v205_v0  ;;  %166 = vmatprep.mubr.msk.f32.mxu0 %vm206_vm1, %v205_v0  ;;  %vm39_vm2 = vcmask 261120   ;;  %v38_v2 = vld [vmem:[#allocation4] sm:$0xff]  ;;  %v36_v3 = vld [vmem:[%s262_s0] sm:$0xff]  ;;  %vm130_vm4 = vcmask 64512  }
  0x13   :  { %173 = vset.pattern.permute.xlu0 %v207_v1  ;;  %v118_v4 = vld [vmem:[%s264_s2] sm:$0xff]  ;;  %165 = vmatpush3.xpose.msk.msra.mxu0 %vm39_vm2, %v38_v2  ;;  %v37_v5 = vmul.f32 10.0, %v36_v3 }
  0x14   :  { %121 = vperm.xlu0 %173, %v118_v4   ;;  %v161_v9 = vld [vmem:[%s265_s3] ss:$0 sm:$0xff] }
  0x16   :  { %167 = vmatmul.mubr.msk.f32.vlgmr.msra.gmra.mrb[0].mxu0 %vm39_vm2, %v37_v5 }
  0x19   :  { %v137_v15 = vld [vmem:[#allocation3] sm:$0xff]  ;;  %v128_v16 = vld [vmem:[#allocation2] sm:$0xff] }
  0x93   :  { %v122_v10 = vpop.permute.xlu0 %121 }
  0x94   :  { %vm127_vm3 = vcmp.eq.s32.totalorder %v122_v10, %v161_v9 }
  0xe9   :  { %v112_v6 = vpop.f32.mrb[0].mxu0 }
  0xea   :  { %v116_v7 = vmul.f32 1.442695, %v112_v6  ;;  %v168_v8 = vpop.f32.mrb[1].mxu0 }
  0xec   :  { %174 = vpow2.f32 %v116_v7 }
  0xf6   :  { %v175_v11 = vpop.eup %174 }
  0xf7   :  { %v138_v12 = vsel %vm130_vm4, %v175_v11, 0.0  ;;  %v129_v13 = vsel %vm127_vm3, %v175_v11, 0.0 }
  0xf8   :  { %139 = vadd.xlane.f32.xlu1 %v138_v12  ;;  %v131_v14 = vsel %vm130_vm4, %v129_v13, 0.0 }
  0xf9   :  { %132 = vadd.xlane.f32.xlu0 %v131_v14 }
 0x185   :  { %v140_v17 = vpop.xlane.xlu1 %139 }
 0x186   :  { %v141_v18 = vadd.f32 %v140_v17, %v137_v15  ;;  %v133_v19 = vpop.xlane.xlu0 %132 }
 0x187   :  { %v134_v20 = vadd.f32 %v133_v19, %v128_v16 }
 0x188   :  { %142 = vst.msk [vmem:[#allocation3] sm:$0xff] %vm33_vm0, %v141_v18 }
 0x189   :  { %136 = vst.msk [vmem:[#allocation2] sm:$0xff] %vm33_vm0, %v134_v20 }
 0x18f   :  { %v146_v21 = vld [vmem:[#allocation3] sm:$0xff] }
 0x190   :  { %176 = vlog2.f32 %v146_v21  ;;  %v149_v22 = vld [vmem:[#allocation2] sm:$0xff] }
 0x191   :  { %178 = vlog2.f32 %v149_v22 }
 0x19a   :  { %v177_v23 = vpop.eup %176 }
 0x19b   :  { %v179_v24 = vpop.eup %178  ;;  %v148_v25 = vmul.f32 0.6931472, %v177_v23 }
 0x19c   :  { %v151_v26 = vmul.f32 0.6931472, %v179_v24 }
 0x19e   :  { %v152_v27 = vsub.f32 %v148_v25, %v151_v26 }
 0x1a0   :  { %153 = vst.msk [vmem:[%s266_s4] sm:$0xff] %vm33_vm0, %v152_v27 }
 0x1a1   :  { %158 = vsyncpa [#allocation5], 1 }

</bundles_post_ra>
